<compile_context>
chip_gen: v7x
topology: tpu7x:2x2x1
jax: 0.10.0
libtpu: 0.0.40
codegen_flags: <defaults>
</compile_context>

<pallas_src>
import math

import jax
import jax.numpy as jnp
from jax.experimental import pallas as pl
from jax.experimental.pallas import tpu as pltpu


# ----------------------------- helpers ------------------------------------ #

def _round_up(x, m):
    return ((x + m - 1) // m) * m


def _pad2(a, rows, cols, dtype):
    out = jnp.zeros((rows, cols), dtype)
    return out.at[: a.shape[0], : a.shape[1]].set(a.astype(dtype))


def _vmem_limit_bytes():
    """Generation-aware scoped-VMEM limit (v5e/v6e: 128 MiB phys, v7x: 64 MiB/TC)."""
    try:
        cap = int(getattr(pltpu.get_tpu_info(), "vmem_capacity_bytes", 0)) or None
    except Exception:
        cap = None
    if cap is None:
        cap = 64 * 1024 * 1024  # conservative default (v7x per-TensorCore)
    return max(32 * 1024 * 1024, min(int(0.85 * cap), 112 * 1024 * 1024))


def _sigmoid_stable(z):
    # exp of a non-positive argument (never overflows); the approx EUP reciprocal
    # only sees arguments in (1, 2], so approx=True is safe and keeps VALU slots free.
    e = jnp.exp(-jnp.abs(z))
    r = pl.reciprocal(1.0 + e, approx=True)
    return jnp.where(z >= 0.0, r, e * r)


# ----------------------------- kernels ------------------------------------ #

def gcn_fused_kernel(adj_ref, x_ref, w1_ref, b1_ref, w2_ref, b2_ref, h_ref):
    """Both GCNConv layers in one pass; A_hat is VMEM-resident, read from HBM once."""
    adj = adj_ref[...]
    # layer 1:  H1 = relu(A_hat @ (X @ W1) + b1)     bf16 MXU operands, f32 accumulation
    xw1 = jnp.dot(x_ref[...], w1_ref[...], preferred_element_type=jnp.float32)
    h1 = jnp.dot(adj, xw1.astype(jnp.bfloat16), preferred_element_type=jnp.float32)
    h1 = jnp.maximum(h1 + b1_ref[...], 0.0)
    # layer 2:  H = sigmoid(A_hat @ (H1 @ W2) + b2)
    h1w2 = jnp.dot(h1.astype(jnp.bfloat16), w2_ref[...],
                   preferred_element_type=jnp.float32)
    z = jnp.dot(adj, h1w2.astype(jnp.bfloat16), preferred_element_type=jnp.float32)
    h_ref[...] = _sigmoid_stable(z + b2_ref[...])


def gcn_layer1_kernel(adj_ref, x_ref, w_ref, b_ref, h1_ref):
    # aggregate this row slab:  (TM, N) @ (N, Fin) -> (TM, Fin)   (f32 acc)
    agg = jnp.dot(adj_ref[...], x_ref[...], preferred_element_type=jnp.float32)
    # transform (lane-dense, 128-padded):  (TM, Fin) @ (Fin, HP)
    z = jnp.dot(agg.astype(jnp.bfloat16), w_ref[...],
                preferred_element_type=jnp.float32) + b_ref[...]
    # relu; store bf16 so layer 2's aggregation matmul gets bf16 MXU inputs.
    h1_ref[...] = jnp.maximum(z, 0.0).astype(h1_ref.dtype)


def gcn_layer2_kernel(adj_ref, h1_ref, w_ref, b_ref, h_ref):
    agg = jnp.dot(adj_ref[...], h1_ref[...], preferred_element_type=jnp.float32)
    z = jnp.dot(agg.astype(jnp.bfloat16), w_ref[...],
                preferred_element_type=jnp.float32) + b_ref[...]
    h_ref[...] = _sigmoid_stable(z)


# ----------------------------- wrapper ------------------------------------ #

def _fused_vmem_bytes(n_pad, fin, hp, fp):
    adj = n_pad * n_pad * 2
    ins = n_pad * fin * 2 + fin * hp * 2 + hp * 4 + hp * fp * 2 + fp * 4
    out = n_pad * fp * 4
    scratch = 3 * n_pad * hp * 4 + 3 * n_pad * fp * 4   # intermediates headroom
    return adj + ins + out + scratch


def _choose_row_tile(n_pad, fin, hp, fp, vmem_limit):
    """Largest row tile (multiple of 16, dividing the 128-padded N) whose streamed
    adjacency slab + residents + output buffers fit the generation's VMEM budget.
    Constant-index resident blocks are conservatively counted double-buffered."""
    budget = int(0.8 * vmem_limit)
    for tm in (1024, 512, 256, 128, 64, 32, 16):
        if n_pad % tm:
            continue
        resid = 2 * max(n_pad * fin * 2 + fin * hp * 2 + hp * 4,      # layer 1
                        n_pad * hp * 2 + hp * fp * 2 + fp * 4)        # layer 2
        vmem = 2 * tm * n_pad * 2 + resid + 2 * tm * hp * 2 + 2 * tm * fp * 4
        if vmem <= budget:
            return tm
    # TODO(synk): graphs too large for a resident H1 need the block-sparse path.
    return 16


def gcn_forward(adj_norm, x, w1, b1, w2, b2, *, force_tiled=False):
    """h = sigmoid(A_hat relu(A_hat X W1 + b1) W2 + b2);  h_clone = (h >= 0.5)."""
    n, fin = x.shape
    hid, fout = w1.shape[1], w2.shape[1]
    hp = _round_up(max(hid, 1), 128)    # lane-dense hidden width
    fp = _round_up(max(fout, 1), 128)   # lane-dense output width
    vmem_limit = _vmem_limit_bytes()

    n128 = _round_up(n, 128)
    use_fused = (not force_tiled) and (
        _fused_vmem_bytes(n128, fin, hp, fp) <= int(0.6 * vmem_limit))

    # bf16 MXU operands (f32 accumulation inside the kernels), zero padded.
    w1p = _pad2(w1, fin, hp, jnp.bfloat16)
    b1p = _pad2(b1.reshape(1, -1), 1, hp, jnp.float32)
    w2p = _pad2(w2, hp, fp, jnp.bfloat16)
    b2p = _pad2(b2.reshape(1, -1), 1, fp, jnp.float32)

    if use_fused:
        # ---- fused path: A_hat resident in VMEM, read from HBM exactly once ----
        adj_p = _pad2(adj_norm, n128, n128, jnp.bfloat16)
        x_p = _pad2(x, n128, fin, jnp.bfloat16)
        h_pad = pl.pallas_call(
            gcn_fused_kernel,
            out_shape=jax.ShapeDtypeStruct((n128, fp), jnp.float32),
            # no grid: whole (padded) operands map straight into VMEM, single-buffered
            compiler_params=pltpu.CompilerParams(vmem_limit_bytes=vmem_limit),
            cost_estimate=pl.CostEstimate(
                flops=2 * n128 * n128 * (hp + fp) + 2 * n128 * (fin * hp + hp * fp),
                transcendentals=n128 * fp,
                bytes_accessed=2 * n128 * n128 + 2 * n128 * fin + 4 * n128 * fp),
        )(adj_p, x_p, w1p, b1p, w2p, b2p)
    else:
        # ---- streaming fallback: two row-tiled calls, A_hat streamed per layer ----
        tm = _choose_row_tile(n128, fin, hp, fp, vmem_limit)
        n_pad = _round_up(n, max(tm, 128))   # multiple of the tile and of 128 lanes
        grid = (n_pad // tm,)

        adj_p = _pad2(adj_norm, n_pad, n_pad, jnp.bfloat16)
        x_p = _pad2(x, n_pad, fin, jnp.bfloat16)

        adj_spec = pl.BlockSpec((tm, n_pad), lambda i: (i, 0))          # streamed slabs
        resident = lambda shape: pl.BlockSpec(shape, lambda i: (0, 0))  # constant index
        params = pltpu.CompilerParams(dimension_semantics=("parallel",),
                                      vmem_limit_bytes=vmem_limit)

        # layer 1: H1 = relu(A_hat @ X @ W1 + b1), stored lane-dense bf16
        h1 = pl.pallas_call(
            gcn_layer1_kernel,
            out_shape=jax.ShapeDtypeStruct((n_pad, hp), jnp.bfloat16),
            grid=grid,
            in_specs=[adj_spec, resident((n_pad, fin)),
                      resident((fin, hp)), resident((1, hp))],
            out_specs=pl.BlockSpec((tm, hp), lambda i: (i, 0)),
            compiler_params=params,
            cost_estimate=pl.CostEstimate(
                flops=2 * n_pad * n_pad * fin + 2 * n_pad * fin * hp,
                transcendentals=0,
                bytes_accessed=2 * n_pad * n_pad + 2 * n_pad * (fin + hp)),
        )(adj_p, x_p, w1p, b1p)

        # layer 2: H = sigmoid(A_hat @ H1 @ W2 + b2)
        h_pad = pl.pallas_call(
            gcn_layer2_kernel,
            out_shape=jax.ShapeDtypeStruct((n_pad, fp), jnp.float32),
            grid=grid,
            in_specs=[adj_spec, resident((n_pad, hp)),
                      resident((hp, fp)), resident((1, fp))],
            out_specs=pl.BlockSpec((tm, fp), lambda i: (i, 0)),
            compiler_params=params,
            cost_estimate=pl.CostEstimate(
                flops=2 * n_pad * n_pad * hp + 2 * n_pad * hp * fp,
                transcendentals=n_pad * fp,
                bytes_accessed=2 * n_pad * n_pad + 2 * n_pad * hp + 4 * n_pad * fp),
        )(adj_p, h1, w2p, b2p)

    h = h_pad[:n, :fout]
    # The python double-loop 0.5 threshold, done in the wrapper so the kernel keeps a
    # single store stream (perf review); exactly consistent with the returned h.
    h_clone = jnp.where(h >= 0.5, 1.0, 0.0)
    return h, h_clone


# ----------------------------- graph glue ---------------------------------- #

def build_norm_adj(edge_index, num_nodes):
    """Dense equivalent of PyG gcn_norm with add_self_loops=True.
    Note: duplicate edges collapse to weight 1 (scatter-set, not scatter-add)."""
    src, dst = edge_index[0], edge_index[1]
    a = jnp.zeros((num_nodes, num_nodes), jnp.float32)
    a = a.at[dst, src].set(1.0)                                   # message src -> dst
    a = jnp.maximum(a, jnp.eye(num_nodes, dtype=jnp.float32))     # self loops
    deg = a.sum(axis=1)
    dinv = jnp.where(deg > 0, 1.0 / jnp.sqrt(deg), 0.0)
    return dinv[:, None] * a * dinv[None, :]


def _ring_edges(num_nodes, offsets=(1,)):
    idx = jnp.arange(num_nodes)
    srcs, dsts = [], []
    for off in offsets:
        nxt = (idx + off) % num_nodes
        srcs += [idx, nxt]
        dsts += [nxt, idx]
    return jnp.stack([jnp.concatenate(srcs), jnp.concatenate(dsts)], axis=0)


def _reference(adj, x, w1, b1, w2, b2):
    h1 = jnp.maximum(adj @ (x @ w1) + b1, 0.0)
    return jax.nn.sigmoid(adj @ (h1 @ w2) + b2)


if __name__ == "__main__":
    key = jax.random.PRNGKey(0)
    k_x, k_w1, k_b1, k_w2, k_b2, k_x2 = jax.random.split(key, 6)

    # GCN(in_feats, h_feats): hidden = floor((h_feats + in_feats) / 2)
    in_feats, h_feats = 8, 4
    hidden_feats = math.floor((h_feats + in_feats) / 2)   # = 6

    s1 = math.sqrt(6.0 / (in_feats + hidden_feats))
    s2 = math.sqrt(6.0 / (hidden_feats + h_feats))
    w1 = jax.random.uniform(k_w1, (in_feats, hidden_feats), jnp.float32, -s1, s1)
    b1 = 0.1 * jax.random.normal(k_b1, (hidden_feats,), jnp.float32)
    w2 = jax.random.uniform(k_w2, (hidden_feats, h_feats), jnp.float32, -s2, s2)
    b2 = 0.1 * jax.random.normal(k_b2, (h_feats,), jnp.float32)

    # --- case 1: small ring graph -> fused single-pallas_call path ---
    n1 = 16
    x1 = jax.random.normal(k_x, (n1, in_feats), jnp.float32)
    adj1 = build_norm_adj(_ring_edges(n1, offsets=(1,)), n1)
    h, h_clone = gcn_forward(adj1, x1, w1, b1, w2, b2)
    jax.block_until_ready((h, h_clone))

    ref1 = _reference(adj1, x1, w1, b1, w2, b2)
    assert h.shape == (n1, h_feats) and h_clone.shape == (n1, h_feats)
    assert jnp.allclose(h, ref1, atol=3e-2), "fused path: h mismatch vs reference"
    assert jnp.array_equal(h_clone, jnp.where(h >= 0.5, 1.0, 0.0))

    # --- case 2: larger, non-128-multiple graph -> streamed/tiled fallback ---
    n2 = 300
    x2 = jax.random.normal(k_x2, (n2, in_feats), jnp.float32)
    adj2 = build_norm_adj(_ring_edges(n2, offsets=(1, 7)), n2)
    h2, h2_clone = gcn_forward(adj2, x2, w1, b1, w2, b2, force_tiled=True)
    jax.block_until_ready((h2, h2_clone))

    ref2 = _reference(adj2, x2, w1, b1, w2, b2)
    assert h2.shape == (n2, h_feats) and h2_clone.shape == (n2, h_feats)
    assert jnp.allclose(h2, ref2, atol=3e-2), "tiled path: h mismatch vs reference"
    assert jnp.array_equal(h2_clone, jnp.where(h2 >= 0.5, 1.0, 0.0))

    print("KERNEL_OK")
</pallas_src>

<mosaic_0001>
module attributes {stable_mosaic.version = 11 : i64} {
  func.func @gcn_fused_kernel(%arg0: memref<128x128xbf16, #tpu.memory_space<vmem>>, %arg1: memref<128x8xbf16, #tpu.memory_space<vmem>>, %arg2: memref<8x128xbf16, #tpu.memory_space<vmem>>, %arg3: memref<1x128xf32, #tpu.memory_space<vmem>>, %arg4: memref<128x128xbf16, #tpu.memory_space<vmem>>, %arg5: memref<1x128xf32, #tpu.memory_space<vmem>>, %arg6: memref<128x128xf32, #tpu.memory_space<vmem>>) attributes {dimension_semantics = [], scalar_prefetch = 0 : i64, scratch_operands = 0 : i64, tpu.core_type = #tpu.core_type<tc>} {
    %c0 = arith.constant 0 : index
    %c0_0 = arith.constant 0 : index
    %0 = vector.load %arg0[%c0, %c0_0] : memref<128x128xbf16, #tpu.memory_space<vmem>>, vector<128x128xbf16>
    %c0_1 = arith.constant 0 : index
    %c0_2 = arith.constant 0 : index
    %1 = vector.load %arg1[%c0_1, %c0_2] : memref<128x8xbf16, #tpu.memory_space<vmem>>, vector<128x8xbf16>
    %c0_3 = arith.constant 0 : index
    %c0_4 = arith.constant 0 : index
    %2 = vector.load %arg2[%c0_3, %c0_4] : memref<8x128xbf16, #tpu.memory_space<vmem>>, vector<8x128xbf16>
    %cst = arith.constant dense<0.000000e+00> : vector<128x128xf32>
    %3 = tpu.matmul %1, %2, %cst {dimension_numbers = #tpu.dot_dimension_numbers<[1], [0], [0], [1], [0, 0, 1, 1], [], []>} : vector<128x8xbf16>, vector<8x128xbf16>, vector<128x128xf32> -> vector<128x128xf32>
    %4 = arith.truncf %3 : vector<128x128xf32> to vector<128x128xbf16>
    %cst_5 = arith.constant dense<0.000000e+00> : vector<128x128xf32>
    %5 = tpu.matmul %0, %4, %cst_5 {dimension_numbers = #tpu.dot_dimension_numbers<[1], [0], [0], [1], [0, 0, 1, 1], [], []>} : vector<128x128xbf16>, vector<128x128xbf16>, vector<128x128xf32> -> vector<128x128xf32>
    %c0_6 = arith.constant 0 : index
    %c0_7 = arith.constant 0 : index
    %6 = vector.load %arg3[%c0_6, %c0_7] : memref<1x128xf32, #tpu.memory_space<vmem>>, vector<1x128xf32>
    %7 = vector.broadcast %6 : vector<1x128xf32> to vector<128x128xf32>
    %8 = arith.addf %5, %7 : vector<128x128xf32>
    %cst_8 = arith.constant 0.000000e+00 : f32
    %9 = vector.broadcast %cst_8 : f32 to vector<128x128xf32>
    %10 = arith.maximumf %8, %9 : vector<128x128xf32>
    %11 = arith.truncf %10 : vector<128x128xf32> to vector<128x128xbf16>
    %c0_9 = arith.constant 0 : index
    %c0_10 = arith.constant 0 : index
    %12 = vector.load %arg4[%c0_9, %c0_10] : memref<128x128xbf16, #tpu.memory_space<vmem>>, vector<128x128xbf16>
    %cst_11 = arith.constant dense<0.000000e+00> : vector<128x128xf32>
    %13 = tpu.matmul %11, %12, %cst_11 {dimension_numbers = #tpu.dot_dimension_numbers<[1], [0], [0], [1], [0, 0, 1, 1], [], []>} : vector<128x128xbf16>, vector<128x128xbf16>, vector<128x128xf32> -> vector<128x128xf32>
    %14 = arith.truncf %13 : vector<128x128xf32> to vector<128x128xbf16>
    %cst_12 = arith.constant dense<0.000000e+00> : vector<128x128xf32>
    %15 = tpu.matmul %0, %14, %cst_12 {dimension_numbers = #tpu.dot_dimension_numbers<[1], [0], [0], [1], [0, 0, 1, 1], [], []>} : vector<128x128xbf16>, vector<128x128xbf16>, vector<128x128xf32> -> vector<128x128xf32>
    %c0_13 = arith.constant 0 : index
    %c0_14 = arith.constant 0 : index
    %16 = vector.load %arg5[%c0_13, %c0_14] : memref<1x128xf32, #tpu.memory_space<vmem>>, vector<1x128xf32>
    %17 = vector.broadcast %16 : vector<1x128xf32> to vector<128x128xf32>
    %18 = arith.addf %15, %17 : vector<128x128xf32>
    %19 = math.absf %18 : vector<128x128xf32>
    %cst_15 = arith.constant 0.000000e+00 : f32
    %20 = vector.broadcast %cst_15 : f32 to vector<128x128xf32>
    %21 = arith.subf %20, %19 : vector<128x128xf32>
    %22 = math.exp %21 : vector<128x128xf32>
    %cst_16 = arith.constant 1.000000e+00 : f32
    %23 = vector.broadcast %cst_16 : f32 to vector<128x128xf32>
    %24 = arith.addf %23, %22 : vector<128x128xf32>
    %25 = tpu.reciprocal %24 {approx = true} : vector<128x128xf32> -> vector<128x128xf32>
    %cst_17 = arith.constant 0.000000e+00 : f32
    %26 = vector.broadcast %cst_17 : f32 to vector<128x128xf32>
    %27 = arith.cmpf oge, %18, %26 : vector<128x128xf32>
    %28 = arith.mulf %22, %25 : vector<128x128xf32>
    %29 = arith.select %27, %25, %28 : vector<128x128xi1>, vector<128x128xf32>
    %c0_18 = arith.constant 0 : index
    %c0_19 = arith.constant 0 : index
    %30 = vector.load %arg6[%c0_18, %c0_19] : memref<128x128xf32, #tpu.memory_space<vmem>>, vector<128x128xf32>
    tpu.vector_store %arg6[%c0_18, %c0_19], %29 {strides = array<i32>} : memref<128x128xf32, #tpu.memory_space<vmem>>, vector<128x128xf32>,
    return
  }
}

</mosaic_0001>

<bundles_post_ra>
// kernel: tpu_custom_call.1
= control target key start
LH: loop header
LB: loop body
LE: loop exit
PB: predicated region body
PF: predicated region fallthrough
CT: control target
= control target key end

     0   :  { %11 = vsyncpa [#allocation3], 0  ;;  %s1488_s0 = inlined_call_operand.vmem [shape: bf16[128,128], index: 0, kind: input, shape index: {}]   ;;  %s1489_s1 = inlined_call_operand.vmem [shape: bf16[128,8], index: 1, kind: input, shape index: {}]   ;;  %s1490_s2 = inlined_call_operand.vmem [shape: bf16[8,128], index: 2, kind: input, shape index: {}]   ;;  %s1491_s3 = inlined_call_operand.vmem [shape: f32[1,128], index: 3, kind: input, shape index: {}]   ;;  %s1492_s4 = inlined_call_operand.hbm [shape: bf16[128,128], index: 4, kind: input, shape index: {}]   ;;  %s1493_s5 = inlined_call_operand.vmem [shape: f32[1,128], index: 5, kind: input, shape index: {}]   ;;  %s1494_s6 = inlined_call_operand.hbm [shape: f32[128,128], index: 6, kind: output, shape index: {}]  }
   0x1   :  { %12 = vsyncpa [#allocation4], 0  ;;  %s1236_s21 = smov [#allocation2]   ;;  %s1188_s25 = scalar_lea.hbm %s1492_s4, 1024 }
   0x2   :  { %s26_s22 = sshll.u32 %s1236_s21, 4  ;;  %p1189_p0 = scmp.ne.s32.totalorder %s1492_s4, %s1188_s25  ;;  %s27_s22 = int_to_ptr.vmem [resolvable:$true] %s26_s22 }
   0x3   :  { %p1192_p1 = scmp.lt.u32.totalorder %s1188_s25, %s1492_s4 }
   0x5   :  { %p1194_p2 = pnand %p1192_p1, %p1189_p0 }
   0x7   :  { %1197 = shalt.err (!%p1194_p2)
}
   0x8   :  { %s1198_s30 = scalar_lea.vmem %s27_s22, 1024  ;;  %p1203_p4 = scmp.lt.s32.totalorder %s27_s22, %s27_s22 }
   0x9   :  { %p1199_p3 = scmp.ne.s32.totalorder %s27_s22, %s1198_s30  ;;  %p1204_p5 = scmp.lt.s32.totalorder %s1198_s30, %s1198_s30 }
   0xb   :  { %p1205_p6 = por %p1204_p5, %p1203_p4 }
   0xd   :  { %p1206_p7 = pnand %p1205_p6, %p1199_p3 }
   0xf   :  { %1209 = shalt.err (!%p1206_p7)
}
  0x10   :  { %s1237_s7 = smov 64   ;;  %s1238_s8 = smov 4  }
  0x11   :  { %32 = dma.hbm_to_vmem [thread:$0]  %s1492_s4, 1024, %s27_s22, [#allocation3], %s1237_s7, %s1237_s7, %s1238_s8  }
  0x12   :  { %1232 = dma.done.wait [#allocation3], 1024  }
  0x13   :  { %1233 = vsyncadd [#allocation3], 4294966272  ;;  %vm137_vm0 = vcmask 1043456   ;;  %vm112_vm1 = vcmask 64512   ;;  %v71_v0 = vld [vmem:[%s1490_s2] sm:$0xf] }
  0x14   :  { %1093 = vmatprep.subr.msk.bf16.mxu0 %vm137_vm0, %v71_v0  ;;  %v139_v1 = vsel %vm137_vm0, %v71_v0, 0  ;;  %v1100_v2 = vld [vmem:[%s1489_s1] sm:$0xff]   ;;  %v1101_v3 = vld [vmem:[%s1489_s1 + $0x8] sm:$0xff]   ;;  %v1102_v4 = vld [vmem:[%s1489_s1 + $0x10] sm:$0xff]  }
  0x15   :  { %964 = vmatpush3.bf16.msra.mxu0 %v139_v1  ;;  %965 = vmatprep.mubr.msk.bf16.mxu0 %vm112_vm1, %v1100_v2  ;;  %v1103_v5 = vld [vmem:[%s1489_s1 + $0x18] sm:$0xff]   ;;  %v1104_v6 = vld [vmem:[%s1489_s1 + $0x20] sm:$0xff]   ;;  %v1105_v7 = vld [vmem:[%s1489_s1 + $0x28] sm:$0xff]  }
  0x16   :  { %v1106_v8 = vld [vmem:[%s1489_s1 + $0x30] sm:$0xff]   ;;  %v1107_v9 = vld [vmem:[%s1489_s1 + $0x38] sm:$0xff]   ;;  %v1327_v10 = vld [vmem:[%s1488_s0] sm:$0xff]  }
  0x17   :  { %997 = vmatprep.mubr.bf16.mxu1 %v1327_v10  ;;  %v1116_v11 = vld [vmem:[#allocation2] sm:$0xff]   ;;  %v1117_v12 = vld [vmem:[#allocation2 + $0x8] sm:$0xff]   ;;  %v1118_v13 = vld [vmem:[#allocation2 + $0x10] sm:$0xff]  }
  0x18   :  { %966 = vmatmul.mubr.msk.bf16.vlgmr.msra.gmra.mrb[0].mxu0 %vm112_vm1, %v1101_v3  ;;  %1013 = vmatprep.subr.bf16.mxu0 %v1116_v11  ;;  %v1119_v14 = vld [vmem:[#allocation2 + $0x18] sm:$0xff]   ;;  %v1120_v15 = vld [vmem:[#allocation2 + $0x20] sm:$0xff]   ;;  %v1121_v16 = vld [vmem:[#allocation2 + $0x28] sm:$0xff]  }
  0x19   :  { %969 = vmatprep.mubr.msk.bf16.mxu0 %vm112_vm1, %v1102_v4  ;;  %1014 = vmatpush3.bf16.msra.mxu0 %v1116_v11  ;;  %v1333_v41 = vld [vmem:[%s1488_s0 + $0x8] sm:$0xff]   ;;  %v1110_v42 = vld [vmem:[%s1488_s0 + $0x10] sm:$0xff]   ;;  %v1342_v43 = vld [vmem:[%s1488_s0 + $0x18] sm:$0xff]  }
  0x1a   :  { %1015 = vmatprep.subr.bf16.mxu0 %v1117_v12  ;;  %v1347_v44 = vld [vmem:[%s1488_s0 + $0x20] sm:$0xff]   ;;  %v1354_v45 = vld [vmem:[%s1488_s0 + $0x28] sm:$0xff]   ;;  %v1359_v46 = vld [vmem:[%s1488_s0 + $0x30] sm:$0xff]  }
  0x1b   :  { %v1366_v47 = vld [vmem:[%s1488_s0 + $0x38] sm:$0xff]   ;;  %v1122_v48 = vld [vmem:[#allocation2 + $0x30] sm:$0xff]   ;;  %v888_v50 = vld [vmem:[%s1491_s3] ss:$0 sm:$0xff] }
  0x1c   :  { %v1123_v49 = vld [vmem:[#allocation2 + $0x38] sm:$0xff]  }
  0x1d   :  { %1016 = vmatpush3.bf16.msra.mxu0 %v1117_v12 }
  0x1e   :  { %1017 = vmatprep.subr.bf16.mxu0 %v1118_v13 }
  0x20   :  { %970 = vmatmul.mubr.msk.bf16.gmra.mrb[4].mxu0 %vm112_vm1, %v1103_v5 }
  0x21   :  { %973 = vmatprep.mubr.msk.bf16.mxu0 %vm112_vm1, %v1104_v6  ;;  %1018 = vmatpush3.bf16.msra.mxu0 %v1118_v13 }
  0x22   :  { %1019 = vmatprep.subr.bf16.mxu0 %v1119_v14 }
  0x25   :  { %1020 = vmatpush3.bf16.msra.mxu0 %v1119_v14 }
  0x26   :  { %1021 = vmatprep.subr.bf16.mxu0 %v1120_v15 }
  0x28   :  { %974 = vmatmul.mubr.msk.bf16.gmra.mrb[8].mxu0 %vm112_vm1, %v1105_v7 }
  0x29   :  { %977 = vmatprep.mubr.msk.bf16.mxu0 %vm112_vm1, %v1106_v8  ;;  %1022 = vmatpush3.bf16.msra.mxu0 %v1120_v15 }
  0x2a   :  { %1023 = vmatprep.subr.bf16.mxu0 %v1121_v16 }
  0x2d   :  { %1024 = vmatpush3.bf16.msra.mxu0 %v1121_v16 }
  0x2e   :  { %1025 = vmatprep.subr.bf16.mxu0 %v1122_v48 }
  0x30   :  { %978 = vmatmul.mubr.msk.bf16.gmra.mrb[12].mxu0 %vm112_vm1, %v1107_v9 }
  0x31   :  { %1026 = vmatpush3.bf16.msra.mxu0 %v1122_v48 }
  0x32   :  { %1027 = vmatprep.subr.bf16.mxu0 %v1123_v49 }
  0x35   :  { %1028 = vmatpush3.bf16.msra.mxu0 %v1123_v49 }
  0xeb   :  { %v967_v17 = vpop.f32.mrb[0].mxu0 }
  0xec   :  { %v175_v18 = vpop.f32.mrb[1].mxu0 }
  0xed   :  { %v968_v19 = vpop.f32.mrb[2].mxu0 }
  0xee   :  { %v239_v20 = vpack.c.bf16 %v968_v19, %v967_v17  ;;  %v178_v21 = vpop.f32.mrb[3].mxu0 }
  0xef   :  { %v238_v22 = vpack.c.bf16 %v178_v21, %v175_v18 }
  0xf1   :  { %981 = vmatprep.subr.bf16.mxu1 %v238_v22 }
  0xf2   :  { %982 = vmatpush3.bf16.msra.mxu1 %v238_v22 }
  0xf3   :  { %v971_v23 = vpop.f32.mrb[4].mxu0  ;;  %983 = vmatprep.subr.bf16.mxu1 %v239_v20 }
  0xf4   :  { %v191_v24 = vpop.f32.mrb[5].mxu0 }
  0xf5   :  { %v972_v25 = vpop.f32.mrb[6].mxu0 }
  0xf6   :  { %v241_v26 = vpack.c.bf16 %v972_v25, %v971_v23  ;;  %v194_v27 = vpop.f32.mrb[7].mxu0  ;;  %984 = vmatpush3.bf16.msra.mxu1 %v239_v20 }
  0xf7   :  { %v240_v28 = vpack.c.bf16 %v194_v27, %v191_v24 }
  0xf9   :  { %985 = vmatprep.subr.bf16.mxu1 %v240_v28 }
  0xfa   :  { %986 = vmatpush3.bf16.msra.mxu1 %v240_v28 }
  0xfb   :  { %v975_v29 = vpop.f32.mrb[8].mxu0  ;;  %987 = vmatprep.subr.bf16.mxu1 %v241_v26 }
  0xfc   :  { %v207_v30 = vpop.f32.mrb[9].mxu0 }
  0xfd   :  { %v976_v31 = vpop.f32.mrb[10].mxu0 }
  0xfe   :  { %v243_v32 = vpack.c.bf16 %v976_v31, %v975_v29  ;;  %v210_v33 = vpop.f32.mrb[11].mxu0  ;;  %988 = vmatpush3.bf16.msra.mxu1 %v241_v26 }
  0xff   :  { %v242_v34 = vpack.c.bf16 %v210_v33, %v207_v30 }
 0x101   :  { %989 = vmatprep.subr.bf16.mxu1 %v242_v34 }
 0x102   :  { %990 = vmatpush3.bf16.msra.mxu1 %v242_v34 }
 0x103   :  { %v979_v35 = vpop.f32.mrb[12].mxu0  ;;  %991 = vmatprep.subr.bf16.mxu1 %v243_v32 }
 0x104   :  { %v223_v36 = vpop.f32.mrb[13].mxu0 }
 0x105   :  { %v980_v37 = vpop.f32.mrb[14].mxu0 }
 0x106   :  { %v245_v38 = vpack.c.bf16 %v980_v37, %v979_v35  ;;  %v226_v39 = vpop.f32.mrb[15].mxu0  ;;  %992 = vmatpush3.bf16.msra.mxu1 %v243_v32 }
 0x107   :  { %v244_v40 = vpack.c.bf16 %v226_v39, %v223_v36 }
 0x109   :  { %993 = vmatprep.subr.bf16.mxu1 %v244_v40 }
 0x10a   :  { %994 = vmatpush3.bf16.msra.mxu1 %v244_v40 }
 0x10b   :  { %995 = vmatprep.subr.bf16.mxu1 %v245_v38 }
 0x10e   :  { %996 = vmatpush3.bf16.msra.mxu1 %v245_v38 }
 0x111   :  { %998 = vmatmul.mubr.bf16.vlgmr.msra.gmra.mrb[0].mxu1 %v1333_v41 }
 0x112   :  { %1001 = vmatprep.mubr.bf16.mxu1 %v1110_v42 }
 0x119   :  { %1002 = vmatmul.mubr.bf16.gmra.mrb[4].mxu1 %v1342_v43 }
 0x11a   :  { %1005 = vmatprep.mubr.bf16.mxu1 %v1347_v44 }
 0x121   :  { %1006 = vmatmul.mubr.bf16.gmra.mrb[8].mxu1 %v1354_v45 }
 0x122   :  { %1009 = vmatprep.mubr.bf16.mxu1 %v1359_v46 }
 0x129   :  { %1010 = vmatmul.mubr.bf16.gmra.mrb[12].mxu1 %v1366_v47 }
 0x12a   :  { %1065 = vmatprep.mubr.bf16.mxu1 %v1110_v42 }
 0x1e4   :  { %v999_v51 = vpop.f32.mrb[0].mxu1 }
 0x1e5   :  { %v344_v52 = vadd.f32 %v999_v51, %v888_v50  ;;  %v335_v53 = vpop.f32.mrb[1].mxu1 }
 0x1e6   :  { %v336_v54 = vadd.f32 %v888_v50, %v335_v53  ;;  %v1000_v55 = vpop.f32.mrb[2].mxu1 }
 0x1e7   :  { %v347_v56 = vadd.f32 %v1000_v55, %v888_v50  ;;  %v338_v57 = vpop.f32.mrb[3].mxu1  ;;  %v400_v59 = vmax.f32 %v344_v52, 0.0 }
 0x1e8   :  { %v339_v58 = vadd.f32 %v888_v50, %v338_v57  ;;  %v398_v61 = vmax.f32 %v336_v54, 0.0 }
 0x1e9   :  { %v401_v60 = vmax.f32 %v347_v56, 0.0 }
 0x1ea   :  { %v399_v62 = vmax.f32 %v339_v58, 0.0 }
 0x1eb   :  { %v415_v63 = vpack.c.bf16 %v401_v60, %v400_v59 }
 0x1ec   :  { %v414_v0 = vpack.c.bf16 %v399_v62, %v398_v61  ;;  %v1003_v1 = vpop.f32.mrb[4].mxu1 }
 0x1ed   :  { %v360_v2 = vadd.f32 %v1003_v1, %v888_v50  ;;  %v351_v3 = vpop.f32.mrb[5].mxu1 }
 0x1ee   :  { %v352_v4 = vadd.f32 %v888_v50, %v351_v3  ;;  %v1004_v5 = vpop.f32.mrb[6].mxu1  ;;  %1029 = vmatprep.mubr.bf16.mxu0 %v414_v0 }
 0x1ef   :  { %v363_v6 = vadd.f32 %v1004_v5, %v888_v50  ;;  %v354_v7 = vpop.f32.mrb[7].mxu1  ;;  %1030 = vmatmul.mubr.bf16.vlgmr.msra.gmra.mrb[16].mxu0 %v415_v63  ;;  %v404_v9 = vmax.f32 %v360_v2, 0.0 }
 0x1f0   :  { %v355_v8 = vadd.f32 %v888_v50, %v354_v7  ;;  %v402_v12 = vmax.f32 %v352_v4, 0.0 }
 0x1f1   :  { %v405_v11 = vmax.f32 %v363_v6, 0.0 }
 0x1f2   :  { %v403_v13 = vmax.f32 %v355_v8, 0.0 }
 0x1f3   :  { %v417_v14 = vpack.c.bf16 %v405_v11, %v404_v9  ;;  %v1382_v9 = vld [vmem:[%s1493_s5] ss:$0 sm:$0xff]  ;;  %s1239_s5 = smov [#allocation5]  }
 0x1f4   :  { %v416_v15 = vpack.c.bf16 %v403_v13, %v402_v12  ;;  %v1007_v16 = vpop.f32.mrb[8].mxu1  ;;  %s860_s18 = sshll.u32 %s1239_s5, 4  ;;  %s861_s18 = int_to_ptr.vmem [resolvable:$true] %s860_s18 }
 0x1f5   :  { %v376_v17 = vadd.f32 %v1007_v16, %v888_v50  ;;  %v367_v18 = vpop.f32.mrb[9].mxu1  ;;  %s1210_s19 = scalar_lea.vmem %s861_s18, 2048  ;;  %p1215_p9 = scmp.lt.s32.totalorder %s861_s18, %s861_s18 }
 0x1f6   :  { %v368_v19 = vadd.f32 %v888_v50, %v367_v18  ;;  %v1008_v20 = vpop.f32.mrb[10].mxu1  ;;  %1033 = vmatprep.mubr.bf16.mxu0 %v416_v15  ;;  %p1211_p8 = scmp.ne.s32.totalorder %s861_s18, %s1210_s19  ;;  %p1216_p10 = scmp.lt.s32.totalorder %s1210_s19, %s1210_s19 }
 0x1f7   :  { %v379_v21 = vadd.f32 %v1008_v20, %v888_v50  ;;  %v370_v22 = vpop.f32.mrb[11].mxu1  ;;  %1034 = vmatmul.mubr.bf16.gmra.mrb[20].mxu0 %v417_v14  ;;  %v408_v24 = vmax.f32 %v376_v17, 0.0 }
 0x1f8   :  { %v371_v23 = vadd.f32 %v888_v50, %v370_v22  ;;  %v406_v26 = vmax.f32 %v368_v19, 0.0  ;;  %p1217_p11 = por %p1216_p10, %p1215_p9 }
 0x1f9   :  { %v409_v25 = vmax.f32 %v379_v21, 0.0 }
 0x1fa   :  { %v407_v27 = vmax.f32 %v371_v23, 0.0  ;;  %p1218_p12 = pnand %p1217_p11, %p1211_p8 }
 0x1fb   :  { %v419_v28 = vpack.c.bf16 %v409_v25, %v408_v24 }
 0x1fc   :  { %v418_v29 = vpack.c.bf16 %v407_v27, %v406_v26  ;;  %v1011_v30 = vpop.f32.mrb[12].mxu1 }
 0x1fd   :  { %v392_v31 = vadd.f32 %v1011_v30, %v888_v50  ;;  %v383_v32 = vpop.f32.mrb[13].mxu1 }
 0x1fe   :  { %v384_v33 = vadd.f32 %v888_v50, %v383_v32  ;;  %v1012_v34 = vpop.f32.mrb[14].mxu1  ;;  %1037 = vmatprep.mubr.bf16.mxu0 %v418_v29 }
 0x1ff   :  { %v395_v35 = vadd.f32 %v1012_v34, %v888_v50  ;;  %v386_v36 = vpop.f32.mrb[15].mxu1  ;;  %1038 = vmatmul.mubr.bf16.gmra.mrb[24].mxu0 %v419_v28  ;;  %v412_v38 = vmax.f32 %v392_v31, 0.0 }
 0x200   :  { %v387_v37 = vadd.f32 %v888_v50, %v386_v36  ;;  %v410_v40 = vmax.f32 %v384_v33, 0.0 }
 0x201   :  { %v413_v39 = vmax.f32 %v395_v35, 0.0 }
 0x202   :  { %v411_v42 = vmax.f32 %v387_v37, 0.0 }
 0x203   :  { %v421_v48 = vpack.c.bf16 %v413_v39, %v412_v38 }
 0x204   :  { %v420_v49 = vpack.c.bf16 %v411_v42, %v410_v40 }
 0x206   :  { %1041 = vmatprep.mubr.bf16.mxu0 %v420_v49 }
 0x207   :  { %1042 = vmatmul.mubr.bf16.gmra.mrb[28].mxu0 %v421_v48 }
 0x208   :  { %1061 = vmatprep.mubr.bf16.mxu0 %v1327_v10 }
 0x2c2   :  { %v1031_v51 = vpop.f32.mrb[16].mxu0 }
 0x2c3   :  { %v520_v52 = vpop.f32.mrb[17].mxu0 }
 0x2c4   :  { %v1032_v53 = vpop.f32.mrb[18].mxu0 }
 0x2c5   :  { %v584_v54 = vpack.c.bf16 %v1032_v53, %v1031_v51  ;;  %v523_v55 = vpop.f32.mrb[19].mxu0 }
 0x2c6   :  { %v583_v56 = vpack.c.bf16 %v523_v55, %v520_v52 }
 0x2c8   :  { %1045 = vmatprep.subr.bf16.mxu0 %v583_v56  ;;  %1077 = vmatprep.subr.bf16.mxu1 %v583_v56 }
 0x2c9   :  { %1046 = vmatpush3.bf16.msra.mxu0 %v583_v56  ;;  %1085 = vmatpush3.bf16.msra.mxu1 %v583_v56 }
 0x2ca   :  { %v1035_v50 = vpop.f32.mrb[20].mxu0  ;;  %1047 = vmatprep.subr.bf16.mxu0 %v584_v54  ;;  %1078 = vmatprep.subr.bf16.mxu1 %v584_v54 }
 0x2cb   :  { %v536_v57 = vpop.f32.mrb[21].mxu0 }
 0x2cc   :  { %v1036_v58 = vpop.f32.mrb[22].mxu0 }
 0x2cd   :  { %v586_v59 = vpack.c.bf16 %v1036_v58, %v1035_v50  ;;  %v539_v60 = vpop.f32.mrb[23].mxu0  ;;  %1048 = vmatpush3.bf16.msra.mxu0 %v584_v54  ;;  %1086 = vmatpush3.bf16.msra.mxu1 %v584_v54 }
 0x2ce   :  { %v585_v10 = vpack.c.bf16 %v539_v60, %v536_v57 }
 0x2d0   :  { %1049 = vmatprep.subr.bf16.mxu0 %v585_v10  ;;  %1079 = vmatprep.subr.bf16.mxu1 %v585_v10 }
 0x2d1   :  { %1050 = vmatpush3.bf16.msra.mxu0 %v585_v10  ;;  %1087 = vmatpush3.bf16.msra.mxu1 %v585_v10 }
 0x2d2   :  { %v1039_v61 = vpop.f32.mrb[24].mxu0  ;;  %1051 = vmatprep.subr.bf16.mxu0 %v586_v59  ;;  %1080 = vmatprep.subr.bf16.mxu1 %v586_v59 }
 0x2d3   :  { %v552_v62 = vpop.f32.mrb[25].mxu0 }
 0x2d4   :  { %v1040_v63 = vpop.f32.mrb[26].mxu0 }
 0x2d5   :  { %v588_v0 = vpack.c.bf16 %v1040_v63, %v1039_v61  ;;  %v555_v1 = vpop.f32.mrb[27].mxu0  ;;  %1052 = vmatpush3.bf16.msra.mxu0 %v586_v59  ;;  %1088 = vmatpush3.bf16.msra.mxu1 %v586_v59 }
 0x2d6   :  { %v587_v2 = vpack.c.bf16 %v555_v1, %v552_v62 }
 0x2d8   :  { %1053 = vmatprep.subr.bf16.mxu0 %v587_v2  ;;  %1081 = vmatprep.subr.bf16.mxu1 %v587_v2 }
 0x2d9   :  { %1054 = vmatpush3.bf16.msra.mxu0 %v587_v2  ;;  %1089 = vmatpush3.bf16.msra.mxu1 %v587_v2 }
 0x2da   :  { %v1043_v3 = vpop.f32.mrb[28].mxu0  ;;  %1055 = vmatprep.subr.bf16.mxu0 %v588_v0  ;;  %1082 = vmatprep.subr.bf16.mxu1 %v588_v0 }
 0x2db   :  { %v568_v4 = vpop.f32.mrb[29].mxu0 }
 0x2dc   :  { %v1044_v5 = vpop.f32.mrb[30].mxu0 }
 0x2dd   :  { %v590_v6 = vpack.c.bf16 %v1044_v5, %v1043_v3  ;;  %v571_v7 = vpop.f32.mrb[31].mxu0  ;;  %1056 = vmatpush3.bf16.msra.mxu0 %v588_v0  ;;  %1090 = vmatpush3.bf16.msra.mxu1 %v588_v0 }
 0x2de   :  { %v589_v8 = vpack.c.bf16 %v571_v7, %v568_v4 }
 0x2e0   :  { %1057 = vmatprep.subr.bf16.mxu0 %v589_v8  ;;  %1083 = vmatprep.subr.bf16.mxu1 %v589_v8 }
 0x2e1   :  { %1058 = vmatpush3.bf16.msra.mxu0 %v589_v8  ;;  %1091 = vmatpush3.bf16.msra.mxu1 %v589_v8 }
 0x2e2   :  { %1059 = vmatprep.subr.bf16.mxu0 %v590_v6  ;;  %1084 = vmatprep.subr.bf16.mxu1 %v590_v6 }
 0x2e5   :  { %1060 = vmatpush3.bf16.msra.mxu0 %v590_v6  ;;  %1092 = vmatpush3.bf16.msra.mxu1 %v590_v6 }
 0x2e8   :  { %1062 = vmatmul.mubr.bf16.vlgmr.msra.gmra.mrb[32].mxu0 %v1333_v41  ;;  %1066 = vmatmul.mubr.bf16.vlgmr.msra.gmra.mrb[16].mxu1 %v1342_v43 }
 0x2e9   :  { %1069 = vmatprep.mubr.bf16.mxu1 %v1347_v44 }
 0x2f0   :  { %1070 = vmatmul.mubr.bf16.gmra.mrb[20].mxu1 %v1354_v45 }
 0x2f1   :  { %1073 = vmatprep.mubr.bf16.mxu1 %v1359_v46 }
 0x2f8   :  { %1074 = vmatmul.mubr.bf16.gmra.mrb[24].mxu1 %v1366_v47 }
 0x3bb   :  { %v1063_v11 = vpop.f32.mrb[32].mxu0  ;;  %v1067_v12 = vpop.f32.mrb[16].mxu1 }
 0x3bc   :  { %v1385_v13 = vadd.f32 %v1063_v11, %v1382_v9  ;;  %v1388_v41 = vadd.f32 %v1067_v12, %v1382_v9  ;;  %v632_v43 = vpop.f32.mrb[33].mxu0  ;;  %v648_v44 = vpop.f32.mrb[17].mxu1 }
 0x3bd   :  { %v1391_v45 = vadd.f32 %v1382_v9, %v632_v43  ;;  %v1394_v46 = vadd.f32 %v1382_v9, %v648_v44  ;;  %v1064_v47 = vpop.f32.mrb[34].mxu0  ;;  %v1068_v14 = vpop.f32.mrb[18].mxu1 }
 0x3be   :  { %v697_v15 = vand.u32 2147483647, %v1385_v13  ;;  %v701_v16 = vand.u32 2147483647, %v1388_v41  ;;  %v1401_v21 = vadd.f32 %v1064_v47, %v1382_v9  ;;  %v1404_v22 = vadd.f32 %v1068_v14, %v1382_v9  ;;  %v635_v23 = vpop.f32.mrb[35].mxu0  ;;  %v651_v24 = vpop.f32.mrb[19].mxu1 }
 0x3bf   :  { %v695_v17 = vand.u32 2147483647, %v1391_v45  ;;  %v699_v18 = vand.u32 2147483647, %v1394_v46  ;;  %v1407_v27 = vadd.f32 %v1382_v9, %v635_v23  ;;  %v1410_v28 = vadd.f32 %v1382_v9, %v651_v24 }
 0x3c0   :  { %v713_v19 = vsub.f32 0.0, %v697_v15  ;;  %v717_v20 = vsub.f32 0.0, %v701_v16  ;;  %v698_v31 = vand.u32 2147483647, %v1401_v21  ;;  %v702_v35 = vand.u32 2147483647, %v1404_v22 }
 0x3c1   :  { %v711_v25 = vsub.f32 0.0, %v695_v17  ;;  %v715_v26 = vsub.f32 0.0, %v699_v18  ;;  %v696_v36 = vand.u32 2147483647, %v1407_v27  ;;  %v700_v38 = vand.u32 2147483647, %v1410_v28 }
 0x3c2   :  { %v731_v29 = vmul.f32 1.442695, %v713_v19  ;;  %v739_v30 = vmul.f32 1.442695, %v717_v20  ;;  %v714_v34 = vsub.f32 0.0, %v698_v31  ;;  %v718_v42 = vsub.f32 0.0, %v702_v35 }
 0x3c3   :  { %v727_v32 = vmul.f32 1.442695, %v711_v25  ;;  %v735_v33 = vmul.f32 1.442695, %v715_v26  ;;  %v1071_v37 = vpop.f32.mrb[20].mxu1  ;;  %v712_v48 = vsub.f32 0.0, %v696_v36 }
 0x3c4   :  { %1124 = vpow2.f32 %v731_v29  ;;  %v664_v39 = vpop.f32.mrb[21].mxu1  ;;  %v733_v40 = vmul.f32 1.442695, %v714_v34  ;;  %v716_v51 = vsub.f32 0.0, %v700_v38  ;;  %v1417_v52 = vadd.f32 %v1071_v37, %v1382_v9 }
 0x3c5   :  { %1126 = vpow2.f32 %v739_v30  ;;  %v1072_v49 = vpop.f32.mrb[22].mxu1  ;;  %v1420_v53 = vadd.f32 %v1382_v9, %v664_v39  ;;  %v741_v55 = vmul.f32 1.442695, %v718_v42  ;;  %v729_v56 = vmul.f32 1.442695, %v712_v48 }
 0x3c6   :  { %1128 = vpow2.f32 %v727_v32  ;;  %v667_v54 = vpop.f32.mrb[23].mxu1  ;;  %v1423_v50 = vadd.f32 %v1072_v49, %v1382_v9  ;;  %v737_v57 = vmul.f32 1.442695, %v716_v51  ;;  %v705_v58 = vand.u32 2147483647, %v1417_v52 }
 0x3c7   :  { %1130 = vpow2.f32 %v735_v33  ;;  %v703_v59 = vand.u32 2147483647, %v1420_v53  ;;  %v1429_v61 = vadd.f32 %v1382_v9, %v667_v54  ;;  %vm793_vm2 = vcmp.ge.f32.partialorder %v1385_v13, 0.0 }
 0x3c8   :  { %1132 = vpow2.f32 %v733_v40  ;;  %v706_v60 = vand.u32 2147483647, %v1423_v50  ;;  %v721_v10 = vsub.f32 0.0, %v705_v58  ;;  %vm797_vm3 = vcmp.ge.f32.partialorder %v1388_v41, 0.0 }
 0x3c9   :  { %1134 = vpow2.f32 %v741_v55  ;;  %v719_v63 = vsub.f32 0.0, %v703_v59  ;;  %v704_v3 = vand.u32 2147483647, %v1429_v61  ;;  %vm791_vm4 = vcmp.ge.f32.partialorder %v1391_v45, 0.0 }
 0x3ca   :  { %1136 = vpow2.f32 %v729_v56  ;;  %v747_v2 = vmul.f32 1.442695, %v721_v10  ;;  %v722_v7 = vsub.f32 0.0, %v706_v60  ;;  %vm795_vm5 = vcmp.ge.f32.partialorder %v1394_v46, 0.0 }
 0x3cb   :  { %v1075_v62 = vpop.f32.mrb[24].mxu1  ;;  %1138 = vpow2.f32 %v737_v57  ;;  %v743_v6 = vmul.f32 1.442695, %v719_v63  ;;  %v720_v18 = vsub.f32 0.0, %v704_v3  ;;  %vm794_vm6 = vcmp.ge.f32.partialorder %v1401_v21, 0.0 }
 0x3cc   :  { %v1432_v0 = vadd.f32 %v1075_v62, %v1382_v9  ;;  %v680_v1 = vpop.f32.mrb[25].mxu1  ;;  %1140 = vpow2.f32 %v747_v2  ;;  %v749_v23 = vmul.f32 1.442695, %v722_v7  ;;  %vm798_vm7 = vcmp.ge.f32.partialorder %v1404_v22, 0.0 }
 0x3cd   :  { %v1076_v4 = vpop.f32.mrb[26].mxu1  ;;  %v1436_v8 = vadd.f32 %v1382_v9, %v680_v1  ;;  %1142 = vpow2.f32 %v743_v6  ;;  %v745_v34 = vmul.f32 1.442695, %v720_v18  ;;  %vm792_vm8 = vcmp.ge.f32.partialorder %v1407_v27, 0.0 }
 0x3ce   :  { %v1125_v5 = vpop.eup %1124  ;;  %v709_v43 = vand.u32 2147483647, %v1432_v0  ;;  %v1440_v44 = vadd.f32 %v1076_v4, %v1382_v9  ;;  %v683_v47 = vpop.f32.mrb[27].mxu1  ;;  %vm796_vm9 = vcmp.ge.f32.partialorder %v1410_v28, 0.0  ;;  %vm801_vm10 = vcmp.ge.f32.partialorder %v1417_v52, 0.0 }
 0x3cf   :  { %v1127_v11 = vpop.eup %1126  ;;  %v761_v12 = vadd.f32 1.0, %v1125_v5  ;;  %v707_v24 = vand.u32 2147483647, %v1436_v8  ;;  %v1445_v31 = vadd.f32 %v1382_v9, %v683_v47  ;;  %vm799_vm11 = vcmp.ge.f32.partialorder %v1420_v53, 0.0 }
 0x3d0   :  { %v1129_v14 = vpop.eup %1128  ;;  %v765_v15 = vadd.f32 1.0, %v1127_v11  ;;  %v725_v26 = vsub.f32 0.0, %v709_v43  ;;  %v710_v29 = vand.u32 2147483647, %v1440_v44  ;;  %vm802_vm12 = vcmp.ge.f32.partialorder %v1423_v50, 0.0 }
 0x3d1   :  { %v1131_v16 = vpop.eup %1130  ;;  %1144 = vrcp.f32 %v761_v12  ;;  %v759_v17 = vadd.f32 1.0, %v1129_v14  ;;  %v723_v37 = vsub.f32 0.0, %v707_v24  ;;  %v708_v38 = vand.u32 2147483647, %v1445_v31 }
 0x3d2   :  { %v1133_v19 = vpop.eup %1132  ;;  %1146 = vrcp.f32 %v765_v15  ;;  %v763_v20 = vadd.f32 1.0, %v1131_v16  ;;  %v755_v40 = vmul.f32 1.442695, %v725_v26  ;;  %v726_v42 = vsub.f32 0.0, %v710_v29 }
 0x3d3   :  { %1148 = vrcp.f32 %v759_v17  ;;  %v762_v25 = vadd.f32 1.0, %v1133_v19  ;;  %v1135_v30 = vpop.eup %1134  ;;  %v724_v48 = vsub.f32 0.0, %v708_v38  ;;  %v751_v54 = vmul.f32 1.442695, %v723_v37 }
 0x3d4   :  { %1150 = vrcp.f32 %v763_v20  ;;  %v1137_v32 = vpop.eup %1136  ;;  %v766_v33 = vadd.f32 1.0, %v1135_v30  ;;  %v757_v57 = vmul.f32 1.442695, %v726_v42  ;;  %vm800_vm13 = vcmp.ge.f32.partialorder %v1429_v61, 0.0 }
 0x3d5   :  { %1152 = vrcp.f32 %v762_v25  ;;  %v1447_v35 = vpop.eup %1138  ;;  %v760_v36 = vadd.f32 1.0, %v1137_v32  ;;  %v753_v60 = vmul.f32 1.442695, %v724_v48  ;;  %vm805_vm14 = vcmp.ge.f32.partialorder %v1432_v0, 0.0 }
 0x3d6   :  { %1154 = vpow2.f32 %v749_v23  ;;  %v764_v39 = vadd.f32 1.0, %v1447_v35  ;;  %v1451_v9 = vpop.eup %1140  ;;  %vm803_vm15 = vcmp.ge.f32.partialorder %v1436_v8, 0.0  ;;  %vm806_vm0 = vcmp.ge.f32.partialorder %v1440_v44, 0.0 }
 0x3d7   :  { %1156 = vrcp.f32 %v766_v33  ;;  %v1453_v49 = vpop.eup %1142  ;;  %v769_v51 = vadd.f32 1.0, %v1451_v9  ;;  %vm804_vm1 = vcmp.ge.f32.partialorder %v1445_v31, 0.0 }
 0x3d8   :  { %1158 = vrcp.f32 %v760_v36  ;;  %v767_v56 = vadd.f32 1.0, %v1453_v49 }
 0x3d9   :  { %1160 = vrcp.f32 %v764_v39 }
 0x3da   :  { %1162 = vpow2.f32 %v745_v34 }
 0x3db   :  { %v1145_v55 = vpop.eup %1144  ;;  %1164 = vpow2.f32 %v755_v40 }
 0x3dc   :  { %v1147_v58 = vpop.eup %1146  ;;  %v809_v59 = vmul.f32 %v1145_v55, %v1125_v5  ;;  %1166 = vrcp.f32 %v769_v51 }
 0x3dd   :  { %v1149_v10 = vpop.eup %1148  ;;  %v813_v62 = vmul.f32 %v1147_v58, %v1127_v11  ;;  %1168 = vrcp.f32 %v767_v56 }
 0x3de   :  { %v1151_v63 = vpop.eup %1150  ;;  %v825_v1 = vsel %vm793_vm2, %v1145_v55, %v809_v59  ;;  %v807_v2 = vmul.f32 %v1149_v10, %v1129_v14  ;;  %1170 = vpow2.f32 %v751_v54 }
 0x3df   :  { %v1153_v3 = vpop.eup %1152  ;;  %841 = vst [vmem:[#allocation5 + $0x10] sm:$0xff] %v825_v1  ;;  %v829_v4 = vsel %vm797_vm3, %v1147_v58, %v813_v62  ;;  %v811_v6 = vmul.f32 %v1151_v63, %v1131_v16  ;;  %1172 = vpow2.f32 %v757_v57 }
 0x3e0   :  { %v1155_v5 = vpop.eup %1154  ;;  %845 = vst [vmem:[#allocation5 + $0x30] sm:$0xff] %v829_v4  ;;  %v823_v7 = vsel %vm791_vm4, %v1149_v10, %v807_v2  ;;  %v810_v13 = vmul.f32 %v1153_v3, %v1133_v19  ;;  %1174 = vpow2.f32 %v753_v60 }
 0x3e1   :  { %v1157_v11 = vpop.eup %1156  ;;  %839 = vst [vmem:[#allocation5] sm:$0xff] %v823_v7  ;;  %v827_v12 = vsel %vm795_vm5, %v1151_v63, %v811_v6  ;;  %v770_v41 = vadd.f32 1.0, %v1155_v5 }
 0x3e2   :  { %v1159_v43 = vpop.eup %1158  ;;  %843 = vst [vmem:[#allocation5 + $0x20] sm:$0xff] %v827_v12  ;;  %v826_v47 = vsel %vm794_vm6, %v1153_v3, %v810_v13  ;;  %v814_v14 = vmul.f32 %v1157_v11, %v1135_v30 }
 0x3e3   :  { %v1161_v45 = vpop.eup %1160  ;;  %842 = vst [vmem:[#allocation5 + $0x18] sm:$0xff] %v826_v47  ;;  %v808_v15 = vmul.f32 %v1159_v43, %v1137_v32  ;;  %1176 = vrcp.f32 %v770_v41 }
 0x3e4   :  { %v1163_v16 = vpop.eup %1162  ;;  %v830_v46 = vsel %vm798_vm7, %v1157_v11, %v814_v14  ;;  %v812_v17 = vmul.f32 %v1161_v45, %v1447_v35 }
 0x3e5   :  { %v1165_v18 = vpop.eup %1164  ;;  %846 = vst [vmem:[#allocation5 + $0x38] sm:$0xff] %v830_v46  ;;  %v824_v21 = vsel %vm792_vm8, %v1159_v43, %v808_v15  ;;  %v768_v19 = vadd.f32 1.0, %v1163_v16 }
 0x3e6   :  { %v1167_v20 = vpop.eup %1166  ;;  %840 = vst [vmem:[#allocation5 + $0x8] sm:$0xff] %v824_v21  ;;  %v828_v23 = vsel %vm796_vm9, %v1161_v45, %v812_v17  ;;  %v773_v24 = vadd.f32 1.0, %v1165_v18 }
 0x3e7   :  { %v1169_v25 = vpop.eup %1168  ;;  %844 = vst [vmem:[#allocation5 + $0x28] sm:$0xff] %v828_v23  ;;  %v817_v22 = vmul.f32 %v1167_v20, %v1451_v9  ;;  %1178 = vrcp.f32 %v768_v19 }
 0x3e8   :  { %v1171_v26 = vpop.eup %1170  ;;  %v815_v27 = vmul.f32 %v1169_v25, %v1453_v49  ;;  %1180 = vrcp.f32 %v773_v24 }
 0x3e9   :  { %v1173_v29 = vpop.eup %1172  ;;  %v833_v30 = vsel %vm801_vm10, %v1167_v20, %v817_v22  ;;  %v771_v28 = vadd.f32 1.0, %v1171_v26 }
 0x3ea   :  { %v1175_v32 = vpop.eup %1174  ;;  %849 = vst [vmem:[#allocation5 + $0x50] sm:$0xff] %v833_v30  ;;  %v831_v33 = vsel %vm799_vm11, %v1169_v25, %v815_v27  ;;  %v774_v34 = vadd.f32 1.0, %v1173_v29 }
 0x3eb   :  { %847 = vst [vmem:[#allocation5 + $0x40] sm:$0xff] %v831_v33  ;;  %1182 = vrcp.f32 %v771_v28  ;;  %v772_v35 = vadd.f32 1.0, %v1175_v32 }
 0x3ec   :  { %1184 = vrcp.f32 %v774_v34 }
 0x3ed   :  { %v1177_v36 = vpop.eup %1176  ;;  %1186 = vrcp.f32 %v772_v35 }
 0x3ee   :  { %v818_v37 = vmul.f32 %v1177_v36, %v1155_v5 }
 0x3f0   :  { %v834_v52 = vsel %vm802_vm12, %v1177_v36, %v818_v37 }
 0x3f1   :  { %v1179_v38 = vpop.eup %1178  ;;  %850 = vst [vmem:[#allocation5 + $0x58] sm:$0xff] %v834_v52 }
 0x3f2   :  { %v1181_v39 = vpop.eup %1180  ;;  %v816_v40 = vmul.f32 %v1179_v38, %v1163_v16 }
 0x3f3   :  { %v821_v53 = vmul.f32 %v1181_v39, %v1165_v18 }
 0x3f4   :  { %v832_v42 = vsel %vm800_vm13, %v1179_v38, %v816_v40 }
 0x3f5   :  { %v1183_v48 = vpop.eup %1182  ;;  %848 = vst [vmem:[#allocation5 + $0x48] sm:$0xff] %v832_v42  ;;  %v837_v9 = vsel %vm805_vm14, %v1181_v39, %v821_v53 }
 0x3f6   :  { %v1185_v49 = vpop.eup %1184  ;;  %853 = vst [vmem:[#allocation5 + $0x70] sm:$0xff] %v837_v9  ;;  %v819_v51 = vmul.f32 %v1183_v48, %v1171_v26 }
 0x3f7   :  { %v1187_v50 = vpop.eup %1186  ;;  %v822_v54 = vmul.f32 %v1185_v49, %v1173_v29 }
 0x3f8   :  { %v835_v55 = vsel %vm803_vm15, %v1183_v48, %v819_v51  ;;  %v820_v61 = vmul.f32 %v1187_v50, %v1175_v32 }
 0x3f9   :  { %851 = vst [vmem:[#allocation5 + $0x60] sm:$0xff] %v835_v55  ;;  %v838_v56 = vsel %vm806_vm0, %v1185_v49, %v822_v54 }
 0x3fa   :  { %854 = vst [vmem:[#allocation5 + $0x78] sm:$0xff] %v838_v56  ;;  %v836_v0 = vsel %vm804_vm1, %v1187_v50, %v820_v61 }
 0x3fb   :  { %852 = vst [vmem:[#allocation5 + $0x68] sm:$0xff] %v836_v0 }
 0x3fc   :  { %1221 = shalt.err (!%p1218_p12)
}
 0x3fd   :  { %s1222_s22 = scalar_lea.hbm %s1494_s6, 2048 }
 0x3fe   :  { %p1223_p13 = scmp.ne.s32.totalorder %s1494_s6, %s1222_s22  ;;  %p1226_p0 = scmp.lt.u32.totalorder %s1222_s22, %s1494_s6 }
 0x400   :  { %p1228_p1 = pnand %p1226_p0, %p1223_p13 }
 0x402   :  { %1231 = shalt.err (!%p1228_p1)
}
 0x403   :  { %s1240_s27 = smov 128   ;;  %s1241_s28 = smov 8  }
 0x404   :  { %866 = dma.vmem_to_hbm [thread:$0]  %s861_s18, 2048, %s1494_s6, [#allocation4], %s1240_s27, %s1240_s27, %s1241_s28  }
 0x405   :  { %1234 = dma.done.wait [#allocation4], 2048  }
 0x406   :  { %1235 = vsyncadd [#allocation4], 4294965248 }
 0x407   :  { %870 = vsyncpa [#allocation3], 1 }
 0x408   :  { %871 = vsyncpa [#allocation4], 1 }

</bundles_post_ra>
